<compile_context>
chip_gen: v5e
topology: v5e:2x2
jax: 0.10.0
libtpu: 0.0.40
codegen_flags: <defaults>
</compile_context>

<pallas_src>
import functools

import jax
import jax.numpy as jnp
from jax import lax
from jax.experimental import pallas as pl
from jax.experimental.pallas import tpu as pltpu


def _lstm_recurrent_kernel(gx_ref, whh_ref, h0_ref, c0_ref,
                           out_ref, hT_ref, cT_ref,
                           h_sc, c_sc, *, hidden_size, chunk):
    """One time-chunk of the LSTM recurrence for one layer.

    gx_ref : (Tc, B, 4H)  precomputed x @ W_ih^T + b_hh for this chunk
    whh_ref: (H, 4H)      hidden->hidden weight, pre-transposed
    h0/c0  : (B, H)       initial state (read only in the first chunk)
    out_ref: (Tc, B, H)   per-step hidden outputs of this chunk
    hT/cT  : (B, H)       final state (written only in the last chunk)
    h_sc/c_sc: f32 VMEM scratch carrying the state across chunks
    """
    ci = pl.program_id(0)
    H = hidden_size

    @pl.when(ci == 0)
    def _():
        h_sc[...] = h0_ref[...].astype(jnp.float32)
        c_sc[...] = c0_ref[...].astype(jnp.float32)

    whh = whh_ref[...]  # load once per chunk, stays in vregs

    def step(t, carry):
        h, c = carry
        gates = gx_ref[t].astype(jnp.float32) + jnp.dot(
            h, whh, preferred_element_type=jnp.float32)
        ingate = jax.nn.sigmoid(gates[:, 0 * H:1 * H])
        forgetgate = jax.nn.sigmoid(gates[:, 1 * H:2 * H])
        cellgate = jnp.tanh(gates[:, 2 * H:3 * H])
        outgate = jax.nn.sigmoid(gates[:, 3 * H:4 * H])
        c = forgetgate * c + ingate * cellgate
        h = outgate * jnp.tanh(c)
        out_ref[t] = h.astype(out_ref.dtype)
        return h, c

    h, c = lax.fori_loop(0, chunk, step, (h_sc[...], c_sc[...]), unroll=True)
    h_sc[...] = h
    c_sc[...] = c

    @pl.when(ci == pl.num_programs(0) - 1)
    def _():
        hT_ref[...] = h.astype(hT_ref.dtype)
        cT_ref[...] = c.astype(cT_ref.dtype)


def _run_lstm_layer(gates_x, whh_t, h0, c0, out_dtype, *, time_chunk):
    """One LSTM layer over the full sequence.

    gates_x: (T, B, 4H)  precomputed input projection (+ bias), time-major
    whh_t:   (H, 4H)     hidden->hidden weight, pre-transposed
    h0, c0:  (B, H)      initial states
    returns (outs (T, B, H), hT (B, H), cT (B, H))
    """
    T, B, G = gates_x.shape
    H = whh_t.shape[0]
    Tc = time_chunk
    assert T % Tc == 0
    n_chunks = T // Tc

    kernel = functools.partial(_lstm_recurrent_kernel,
                               hidden_size=H, chunk=Tc)

    grid_spec = pltpu.PrefetchScalarGridSpec(
        num_scalar_prefetch=0,
        grid=(n_chunks,),
        in_specs=[
            pl.BlockSpec((Tc, B, G), lambda c: (c, 0, 0)),   # gates_x chunk
            pl.BlockSpec((H, G), lambda c: (0, 0)),          # W_hh^T (invariant)
            pl.BlockSpec((B, H), lambda c: (0, 0)),          # h0 (invariant)
            pl.BlockSpec((B, H), lambda c: (0, 0)),          # c0 (invariant)
        ],
        out_specs=(
            pl.BlockSpec((Tc, B, H), lambda c: (c, 0, 0)),   # per-step outputs
            pl.BlockSpec((B, H), lambda c: (0, 0)),          # final h
            pl.BlockSpec((B, H), lambda c: (0, 0)),          # final c
        ),
        scratch_shapes=[
            pltpu.VMEM((B, H), jnp.float32),                 # h carry
            pltpu.VMEM((B, H), jnp.float32),                 # c carry
        ],
    )

    return pl.pallas_call(
        kernel,
        out_shape=(
            jax.ShapeDtypeStruct((T, B, H), out_dtype),
            jax.ShapeDtypeStruct((B, H), out_dtype),
            jax.ShapeDtypeStruct((B, H), out_dtype),
        ),
        grid_spec=grid_spec,
        compiler_params=pltpu.CompilerParams(
            dimension_semantics=("arbitrary",),   # recurrence is sequential
            vmem_limit_bytes=32 * 1024 * 1024,
        ),
    )(gates_x, whh_t, h0, c0)


def _pick_time_chunk(T, target):
    """Largest divisor of T that is <= target."""
    tc = min(T, max(1, target))
    while T % tc != 0:
        tc -= 1
    return tc


def lstm_forward(x, params, init_states=None, *, time_chunk=32):
    """Full multi-layer LSTM forward.

    x: (B, T, input_size)
    params: list of (W_ih (4H, D_in), W_hh (4H, H), b_hh (4H,)) per layer.
    returns: outputs (B, T, H), (h_last (B, H), c_last (B, H))
    """
    B, T, _ = x.shape
    H = params[0][1].shape[1]
    dtype = x.dtype
    if init_states is None:
        h0 = jnp.zeros((B, H), dtype)
        c0 = jnp.zeros((B, H), dtype)
    else:
        h0, c0 = init_states

    Tc = _pick_time_chunk(T, time_chunk)

    # Transpose to time-major ONCE; activations stay (T, B, feat) across layers.
    layer_in = jnp.transpose(x, (1, 0, 2))
    hT = cT = None
    for (wih, whh, b) in params:
        D = layer_in.shape[-1]
        # Hoisted input projection: one big matmul with M = T*B (MXU-friendly),
        # bias folded in here so the recurrent kernel skips the per-step add.
        gates_x = (
            jnp.dot(layer_in.reshape(T * B, D), wih.T,
                    preferred_element_type=jnp.float32)
            + b.astype(jnp.float32)[None, :]
        ).reshape(T, B, 4 * H)
        layer_in, hT, cT = _run_lstm_layer(
            gates_x, whh.T, h0, c0, dtype, time_chunk=Tc)

    outputs = jnp.transpose(layer_in, (1, 0, 2))   # back to (B, T, H) once
    return outputs, (hT, cT)


def init_lstm_params(key, input_size, hidden_size, num_layers, bias=True):
    """Deterministic parameter init mimicking nn.Linear's U(-1/sqrt(fan_in), +)."""
    params = []
    for i in range(num_layers):
        d_in = input_size if i == 0 else hidden_size
        key, k1, k2, k3 = jax.random.split(key, 4)
        bound_ih = 1.0 / jnp.sqrt(d_in)
        bound_hh = 1.0 / jnp.sqrt(hidden_size)
        wih = jax.random.uniform(k1, (4 * hidden_size, d_in),
                                 jnp.float32, -bound_ih, bound_ih)
        whh = jax.random.uniform(k2, (4 * hidden_size, hidden_size),
                                 jnp.float32, -bound_hh, bound_hh)
        if bias:
            b = jax.random.uniform(k3, (4 * hidden_size,),
                                   jnp.float32, -bound_hh, bound_hh)
        else:
            b = jnp.zeros((4 * hidden_size,), jnp.float32)
        params.append((wih, whh, b))
    return params


def _reference_lstm(x, params, init_states=None):
    """Pure-JAX reference of the PyTorch module for correctness checking."""
    B, T, _ = x.shape
    H = params[0][1].shape[1]
    if init_states is None:
        h0 = jnp.zeros((B, H), x.dtype)
        c0 = jnp.zeros((B, H), x.dtype)
    else:
        h0, c0 = init_states
    state = [(h0, c0) for _ in params]
    outs = []
    for t in range(T):
        xt = x[:, t, :]
        for i, (wih, whh, b) in enumerate(params):
            h, c = state[i]
            gates = xt @ wih.T + h @ whh.T + b
            ig = jax.nn.sigmoid(gates[:, :H])
            fg = jax.nn.sigmoid(gates[:, H:2 * H])
            gg = jnp.tanh(gates[:, 2 * H:3 * H])
            og = jax.nn.sigmoid(gates[:, 3 * H:])
            c = fg * c + ig * gg
            xt = og * jnp.tanh(c)
            state[i] = (xt, c)
        outs.append(xt)
    outputs = jnp.stack(outs, axis=1)
    return outputs, (state[-1][0], state[-1][1])


if __name__ == "__main__":
    input_size = 16
    hidden_size = 32
    num_layers = 2
    batch = 8
    seq_len = 16
    time_chunk = 8    # -> grid of 2 chunks: exercises state carry + last-chunk epilogue

    key = jax.random.PRNGKey(0)
    kx, kp = jax.random.split(key)
    x = jax.random.normal(kx, (batch, seq_len, input_size), jnp.float32)
    params = init_lstm_params(kp, input_size, hidden_size, num_layers, bias=True)

    outputs, (h_last, c_last) = lstm_forward(x, params, time_chunk=time_chunk)
    outputs = jax.block_until_ready(outputs)
    h_last = jax.block_until_ready(h_last)
    c_last = jax.block_until_ready(c_last)

    ref_out, (ref_h, ref_c) = _reference_lstm(x, params)
    assert outputs.shape == (batch, seq_len, hidden_size)
    assert h_last.shape == (batch, hidden_size)
    assert c_last.shape == (batch, hidden_size)
    assert jnp.allclose(outputs, ref_out, atol=1e-4, rtol=1e-4)
    assert jnp.allclose(h_last, ref_h, atol=1e-4, rtol=1e-4)
    assert jnp.allclose(c_last, ref_c, atol=1e-4, rtol=1e-4)

    print("KERNEL_OK")
</pallas_src>

<mosaic_0001>
module attributes {stable_mosaic.version = 11 : i64} {
  func.func @_lstm_recurrent_kernel(%arg0: i32, %arg1: memref<8x8x128xf32, #tpu.memory_space<vmem>>, %arg2: memref<32x128xf32, #tpu.memory_space<vmem>>, %arg3: memref<8x32xf32, #tpu.memory_space<vmem>>, %arg4: memref<8x32xf32, #tpu.memory_space<vmem>>, %arg5: memref<8x8x32xf32, #tpu.memory_space<vmem>>, %arg6: memref<8x32xf32, #tpu.memory_space<vmem>>, %arg7: memref<8x32xf32, #tpu.memory_space<vmem>>, %arg8: memref<8x32xf32, #tpu.memory_space<vmem>>, %arg9: memref<8x32xf32, #tpu.memory_space<vmem>>) attributes {dimension_semantics = [#tpu.dimension_semantics<arbitrary>], iteration_bounds = array<i64: 2>, scalar_prefetch = 0 : i64, scratch_operands = 2 : i64, tpu.core_type = #tpu.core_type<tc>, window_params = [{transform_indices = @transform_0, window_bounds = array<i64: 8, 8, 128>}, {pipeline_mode = #tpu.pipeline_mode<synchronous>, transform_indices = @transform_1, window_bounds = array<i64: 32, 128>}, {pipeline_mode = #tpu.pipeline_mode<synchronous>, transform_indices = @transform_2, window_bounds = array<i64: 8, 32>}, {pipeline_mode = #tpu.pipeline_mode<synchronous>, transform_indices = @transform_3, window_bounds = array<i64: 8, 32>}, {transform_indices = @transform_4, window_bounds = array<i64: 8, 8, 32>}, {pipeline_mode = #tpu.pipeline_mode<synchronous>, transform_indices = @transform_5, window_bounds = array<i64: 8, 32>}, {pipeline_mode = #tpu.pipeline_mode<synchronous>, transform_indices = @transform_6, window_bounds = array<i64: 8, 32>}]} {
    %c0_i32 = arith.constant 0 : i32
    %0 = arith.cmpi eq, %arg0, %c0_i32 : i32
    %1 = arith.extui %0 : i1 to i32
    %c0_i32_0 = arith.constant 0 : i32
    %2 = arith.cmpi ne, %1, %c0_i32_0 : i32
    scf.if %2 {
      %c0_76 = arith.constant 0 : index
      %c0_77 = arith.constant 0 : index
      %283 = vector.load %arg3[%c0_76, %c0_77] : memref<8x32xf32, #tpu.memory_space<vmem>>, vector<8x32xf32>
      %c0_78 = arith.constant 0 : index
      %c0_79 = arith.constant 0 : index
      %284 = vector.load %arg8[%c0_78, %c0_79] : memref<8x32xf32, #tpu.memory_space<vmem>>, vector<8x32xf32>
      tpu.vector_store %arg8[%c0_78, %c0_79], %283 {strides = array<i32>} : memref<8x32xf32, #tpu.memory_space<vmem>>, vector<8x32xf32>,
      %c0_80 = arith.constant 0 : index
      %c0_81 = arith.constant 0 : index
      %285 = vector.load %arg4[%c0_80, %c0_81] : memref<8x32xf32, #tpu.memory_space<vmem>>, vector<8x32xf32>
      %c0_82 = arith.constant 0 : index
      %c0_83 = arith.constant 0 : index
      %286 = vector.load %arg9[%c0_82, %c0_83] : memref<8x32xf32, #tpu.memory_space<vmem>>, vector<8x32xf32>
      tpu.vector_store %arg9[%c0_82, %c0_83], %285 {strides = array<i32>} : memref<8x32xf32, #tpu.memory_space<vmem>>, vector<8x32xf32>,
    } else {
    }
    %c0 = arith.constant 0 : index
    %c0_1 = arith.constant 0 : index
    %3 = vector.load %arg2[%c0, %c0_1] : memref<32x128xf32, #tpu.memory_space<vmem>>, vector<32x128xf32>
    %c0_2 = arith.constant 0 : index
    %c0_3 = arith.constant 0 : index
    %4 = vector.load %arg8[%c0_2, %c0_3] : memref<8x32xf32, #tpu.memory_space<vmem>>, vector<8x32xf32>
    %c0_4 = arith.constant 0 : index
    %c0_5 = arith.constant 0 : index
    %5 = vector.load %arg9[%c0_4, %c0_5] : memref<8x32xf32, #tpu.memory_space<vmem>>, vector<8x32xf32>
    %c0_i32_6 = arith.constant 0 : i32
    %6 = arith.index_cast %c0_i32_6 : i32 to index
    %c0_7 = arith.constant 0 : index
    %c0_8 = arith.constant 0 : index
    %7 = vector.load %arg1[%6, %c0_7, %c0_8] : memref<8x8x128xf32, #tpu.memory_space<vmem>>, vector<1x8x128xf32>
    %8 = vector.shape_cast %7 : vector<1x8x128xf32> to vector<8x128xf32>
    %cst = arith.constant dense<0.000000e+00> : vector<8x128xf32>
    %9 = tpu.matmul %4, %3, %cst {dimension_numbers = #tpu.dot_dimension_numbers<[1], [0], [0], [1], [0, 0, 1, 1], [], []>} : vector<8x32xf32>, vector<32x128xf32>, vector<8x128xf32> -> vector<8x128xf32>
    %10 = arith.addf %8, %9 : vector<8x128xf32>
    %11 = vector.extract_strided_slice %10 {offsets = [0, 0], sizes = [8, 32], strides = [1, 1]} : vector<8x128xf32> to vector<8x32xf32>
    %12 = arith.negf %11 : vector<8x32xf32>
    %13 = math.exp %12 : vector<8x32xf32>
    %cst_9 = arith.constant 1.000000e+00 : f32
    %14 = vector.broadcast %cst_9 : f32 to vector<8x32xf32>
    %15 = arith.addf %14, %13 : vector<8x32xf32>
    %16 = arith.divf %14, %15 : vector<8x32xf32>
    %17 = vector.extract_strided_slice %10 {offsets = [0, 32], sizes = [8, 32], strides = [1, 1]} : vector<8x128xf32> to vector<8x32xf32>
    %18 = arith.negf %17 : vector<8x32xf32>
    %19 = math.exp %18 : vector<8x32xf32>
    %cst_10 = arith.constant 1.000000e+00 : f32
    %20 = vector.broadcast %cst_10 : f32 to vector<8x32xf32>
    %21 = arith.addf %20, %19 : vector<8x32xf32>
    %22 = arith.divf %20, %21 : vector<8x32xf32>
    %23 = vector.extract_strided_slice %10 {offsets = [0, 64], sizes = [8, 32], strides = [1, 1]} : vector<8x128xf32> to vector<8x32xf32>
    %24 = math.tanh %23 : vector<8x32xf32>
    %25 = vector.extract_strided_slice %10 {offsets = [0, 96], sizes = [8, 32], strides = [1, 1]} : vector<8x128xf32> to vector<8x32xf32>
    %26 = arith.negf %25 : vector<8x32xf32>
    %27 = math.exp %26 : vector<8x32xf32>
    %cst_11 = arith.constant 1.000000e+00 : f32
    %28 = vector.broadcast %cst_11 : f32 to vector<8x32xf32>
    %29 = arith.addf %28, %27 : vector<8x32xf32>
    %30 = arith.divf %28, %29 : vector<8x32xf32>
    %31 = arith.mulf %22, %5 : vector<8x32xf32>
    %32 = arith.mulf %16, %24 : vector<8x32xf32>
    %33 = arith.addf %31, %32 : vector<8x32xf32>
    %34 = math.tanh %33 : vector<8x32xf32>
    %35 = arith.mulf %30, %34 : vector<8x32xf32>
    %36 = arith.index_cast %c0_i32_6 : i32 to index
    %c0_12 = arith.constant 0 : index
    %c0_13 = arith.constant 0 : index
    %37 = vector.load %arg5[%36, %c0_12, %c0_13] : memref<8x8x32xf32, #tpu.memory_space<vmem>>, vector<1x8x32xf32>
    %38 = vector.shape_cast %37 : vector<1x8x32xf32> to vector<8x32xf32>
    %39 = vector.shape_cast %35 : vector<8x32xf32> to vector<1x8x32xf32>
    tpu.vector_store %arg5[%36, %c0_12, %c0_13], %39 {strides = array<i32>} : memref<8x8x32xf32, #tpu.memory_space<vmem>>, vector<1x8x32xf32>,
    %c1_i32 = arith.constant 1 : i32
    %40 = arith.index_cast %c1_i32 : i32 to index
    %c0_14 = arith.constant 0 : index
    %c0_15 = arith.constant 0 : index
    %41 = vector.load %arg1[%40, %c0_14, %c0_15] : memref<8x8x128xf32, #tpu.memory_space<vmem>>, vector<1x8x128xf32>
    %42 = vector.shape_cast %41 : vector<1x8x128xf32> to vector<8x128xf32>
    %cst_16 = arith.constant dense<0.000000e+00> : vector<8x128xf32>
    %43 = tpu.matmul %35, %3, %cst_16 {dimension_numbers = #tpu.dot_dimension_numbers<[1], [0], [0], [1], [0, 0, 1, 1], [], []>} : vector<8x32xf32>, vector<32x128xf32>, vector<8x128xf32> -> vector<8x128xf32>
    %44 = arith.addf %42, %43 : vector<8x128xf32>
    %45 = vector.extract_strided_slice %44 {offsets = [0, 0], sizes = [8, 32], strides = [1, 1]} : vector<8x128xf32> to vector<8x32xf32>
    %46 = arith.negf %45 : vector<8x32xf32>
    %47 = math.exp %46 : vector<8x32xf32>
    %cst_17 = arith.constant 1.000000e+00 : f32
    %48 = vector.broadcast %cst_17 : f32 to vector<8x32xf32>
    %49 = arith.addf %48, %47 : vector<8x32xf32>
    %50 = arith.divf %48, %49 : vector<8x32xf32>
    %51 = vector.extract_strided_slice %44 {offsets = [0, 32], sizes = [8, 32], strides = [1, 1]} : vector<8x128xf32> to vector<8x32xf32>
    %52 = arith.negf %51 : vector<8x32xf32>
    %53 = math.exp %52 : vector<8x32xf32>
    %cst_18 = arith.constant 1.000000e+00 : f32
    %54 = vector.broadcast %cst_18 : f32 to vector<8x32xf32>
    %55 = arith.addf %54, %53 : vector<8x32xf32>
    %56 = arith.divf %54, %55 : vector<8x32xf32>
    %57 = vector.extract_strided_slice %44 {offsets = [0, 64], sizes = [8, 32], strides = [1, 1]} : vector<8x128xf32> to vector<8x32xf32>
    %58 = math.tanh %57 : vector<8x32xf32>
    %59 = vector.extract_strided_slice %44 {offsets = [0, 96], sizes = [8, 32], strides = [1, 1]} : vector<8x128xf32> to vector<8x32xf32>
    %60 = arith.negf %59 : vector<8x32xf32>
    %61 = math.exp %60 : vector<8x32xf32>
    %cst_19 = arith.constant 1.000000e+00 : f32
    %62 = vector.broadcast %cst_19 : f32 to vector<8x32xf32>
    %63 = arith.addf %62, %61 : vector<8x32xf32>
    %64 = arith.divf %62, %63 : vector<8x32xf32>
    %65 = arith.mulf %56, %33 : vector<8x32xf32>
    %66 = arith.mulf %50, %58 : vector<8x32xf32>
    %67 = arith.addf %65, %66 : vector<8x32xf32>
    %68 = math.tanh %67 : vector<8x32xf32>
    %69 = arith.mulf %64, %68 : vector<8x32xf32>
    %70 = arith.index_cast %c1_i32 : i32 to index
    %c0_20 = arith.constant 0 : index
    %c0_21 = arith.constant 0 : index
    %71 = vector.load %arg5[%70, %c0_20, %c0_21] : memref<8x8x32xf32, #tpu.memory_space<vmem>>, vector<1x8x32xf32>
    %72 = vector.shape_cast %71 : vector<1x8x32xf32> to vector<8x32xf32>
    %73 = vector.shape_cast %69 : vector<8x32xf32> to vector<1x8x32xf32>
    tpu.vector_store %arg5[%70, %c0_20, %c0_21], %73 {strides = array<i32>} : memref<8x8x32xf32, #tpu.memory_space<vmem>>, vector<1x8x32xf32>,
    %c2_i32 = arith.constant 2 : i32
    %74 = arith.index_cast %c2_i32 : i32 to index
    %c0_22 = arith.constant 0 : index
    %c0_23 = arith.constant 0 : index
    %75 = vector.load %arg1[%74, %c0_22, %c0_23] : memref<8x8x128xf32, #tpu.memory_space<vmem>>, vector<1x8x128xf32>
    %76 = vector.shape_cast %75 : vector<1x8x128xf32> to vector<8x128xf32>
    %cst_24 = arith.constant dense<0.000000e+00> : vector<8x128xf32>
    %77 = tpu.matmul %69, %3, %cst_24 {dimension_numbers = #tpu.dot_dimension_numbers<[1], [0], [0], [1], [0, 0, 1, 1], [], []>} : vector<8x32xf32>, vector<32x128xf32>, vector<8x128xf32> -> vector<8x128xf32>
    %78 = arith.addf %76, %77 : vector<8x128xf32>
    %79 = vector.extract_strided_slice %78 {offsets = [0, 0], sizes = [8, 32], strides = [1, 1]} : vector<8x128xf32> to vector<8x32xf32>
    %80 = arith.negf %79 : vector<8x32xf32>
    %81 = math.exp %80 : vector<8x32xf32>
    %cst_25 = arith.constant 1.000000e+00 : f32
    %82 = vector.broadcast %cst_25 : f32 to vector<8x32xf32>
    %83 = arith.addf %82, %81 : vector<8x32xf32>
    %84 = arith.divf %82, %83 : vector<8x32xf32>
    %85 = vector.extract_strided_slice %78 {offsets = [0, 32], sizes = [8, 32], strides = [1, 1]} : vector<8x128xf32> to vector<8x32xf32>
    %86 = arith.negf %85 : vector<8x32xf32>
    %87 = math.exp %86 : vector<8x32xf32>
    %cst_26 = arith.constant 1.000000e+00 : f32
    %88 = vector.broadcast %cst_26 : f32 to vector<8x32xf32>
    %89 = arith.addf %88, %87 : vector<8x32xf32>
    %90 = arith.divf %88, %89 : vector<8x32xf32>
    %91 = vector.extract_strided_slice %78 {offsets = [0, 64], sizes = [8, 32], strides = [1, 1]} : vector<8x128xf32> to vector<8x32xf32>
    %92 = math.tanh %91 : vector<8x32xf32>
    %93 = vector.extract_strided_slice %78 {offsets = [0, 96], sizes = [8, 32], strides = [1, 1]} : vector<8x128xf32> to vector<8x32xf32>
    %94 = arith.negf %93 : vector<8x32xf32>
    %95 = math.exp %94 : vector<8x32xf32>
    %cst_27 = arith.constant 1.000000e+00 : f32
    %96 = vector.broadcast %cst_27 : f32 to vector<8x32xf32>
    %97 = arith.addf %96, %95 : vector<8x32xf32>
    %98 = arith.divf %96, %97 : vector<8x32xf32>
    %99 = arith.mulf %90, %67 : vector<8x32xf32>
    %100 = arith.mulf %84, %92 : vector<8x32xf32>
    %101 = arith.addf %99, %100 : vector<8x32xf32>
    %102 = math.tanh %101 : vector<8x32xf32>
    %103 = arith.mulf %98, %102 : vector<8x32xf32>
    %104 = arith.index_cast %c2_i32 : i32 to index
    %c0_28 = arith.constant 0 : index
    %c0_29 = arith.constant 0 : index
    %105 = vector.load %arg5[%104, %c0_28, %c0_29] : memref<8x8x32xf32, #tpu.memory_space<vmem>>, vector<1x8x32xf32>
    %106 = vector.shape_cast %105 : vector<1x8x32xf32> to vector<8x32xf32>
    %107 = vector.shape_cast %103 : vector<8x32xf32> to vector<1x8x32xf32>
    tpu.vector_store %arg5[%104, %c0_28, %c0_29], %107 {strides = array<i32>} : memref<8x8x32xf32, #tpu.memory_space<vmem>>, vector<1x8x32xf32>,
    %c3_i32 = arith.constant 3 : i32
    %108 = arith.index_cast %c3_i32 : i32 to index
    %c0_30 = arith.constant 0 : index
    %c0_31 = arith.constant 0 : index
    %109 = vector.load %arg1[%108, %c0_30, %c0_31] : memref<8x8x128xf32, #tpu.memory_space<vmem>>, vector<1x8x128xf32>
    %110 = vector.shape_cast %109 : vector<1x8x128xf32> to vector<8x128xf32>
    %cst_32 = arith.constant dense<0.000000e+00> : vector<8x128xf32>
    %111 = tpu.matmul %103, %3, %cst_32 {dimension_numbers = #tpu.dot_dimension_numbers<[1], [0], [0], [1], [0, 0, 1, 1], [], []>} : vector<8x32xf32>, vector<32x128xf32>, vector<8x128xf32> -> vector<8x128xf32>
    %112 = arith.addf %110, %111 : vector<8x128xf32>
    %113 = vector.extract_strided_slice %112 {offsets = [0, 0], sizes = [8, 32], strides = [1, 1]} : vector<8x128xf32> to vector<8x32xf32>
    %114 = arith.negf %113 : vector<8x32xf32>
    %115 = math.exp %114 : vector<8x32xf32>
    %cst_33 = arith.constant 1.000000e+00 : f32
    %116 = vector.broadcast %cst_33 : f32 to vector<8x32xf32>
    %117 = arith.addf %116, %115 : vector<8x32xf32>
    %118 = arith.divf %116, %117 : vector<8x32xf32>
    %119 = vector.extract_strided_slice %112 {offsets = [0, 32], sizes = [8, 32], strides = [1, 1]} : vector<8x128xf32> to vector<8x32xf32>
    %120 = arith.negf %119 : vector<8x32xf32>
    %121 = math.exp %120 : vector<8x32xf32>
    %cst_34 = arith.constant 1.000000e+00 : f32
    %122 = vector.broadcast %cst_34 : f32 to vector<8x32xf32>
    %123 = arith.addf %122, %121 : vector<8x32xf32>
    %124 = arith.divf %122, %123 : vector<8x32xf32>
    %125 = vector.extract_strided_slice %112 {offsets = [0, 64], sizes = [8, 32], strides = [1, 1]} : vector<8x128xf32> to vector<8x32xf32>
    %126 = math.tanh %125 : vector<8x32xf32>
    %127 = vector.extract_strided_slice %112 {offsets = [0, 96], sizes = [8, 32], strides = [1, 1]} : vector<8x128xf32> to vector<8x32xf32>
    %128 = arith.negf %127 : vector<8x32xf32>
    %129 = math.exp %128 : vector<8x32xf32>
    %cst_35 = arith.constant 1.000000e+00 : f32
    %130 = vector.broadcast %cst_35 : f32 to vector<8x32xf32>
    %131 = arith.addf %130, %129 : vector<8x32xf32>
    %132 = arith.divf %130, %131 : vector<8x32xf32>
    %133 = arith.mulf %124, %101 : vector<8x32xf32>
    %134 = arith.mulf %118, %126 : vector<8x32xf32>
    %135 = arith.addf %133, %134 : vector<8x32xf32>
    %136 = math.tanh %135 : vector<8x32xf32>
    %137 = arith.mulf %132, %136 : vector<8x32xf32>
    %138 = arith.index_cast %c3_i32 : i32 to index
    %c0_36 = arith.constant 0 : index
    %c0_37 = arith.constant 0 : index
    %139 = vector.load %arg5[%138, %c0_36, %c0_37] : memref<8x8x32xf32, #tpu.memory_space<vmem>>, vector<1x8x32xf32>
    %140 = vector.shape_cast %139 : vector<1x8x32xf32> to vector<8x32xf32>
    %141 = vector.shape_cast %137 : vector<8x32xf32> to vector<1x8x32xf32>
    tpu.vector_store %arg5[%138, %c0_36, %c0_37], %141 {strides = array<i32>} : memref<8x8x32xf32, #tpu.memory_space<vmem>>, vector<1x8x32xf32>,
    %c4_i32 = arith.constant 4 : i32
    %142 = arith.index_cast %c4_i32 : i32 to index
    %c0_38 = arith.constant 0 : index
    %c0_39 = arith.constant 0 : index
    %143 = vector.load %arg1[%142, %c0_38, %c0_39] : memref<8x8x128xf32, #tpu.memory_space<vmem>>, vector<1x8x128xf32>
    %144 = vector.shape_cast %143 : vector<1x8x128xf32> to vector<8x128xf32>
    %cst_40 = arith.constant dense<0.000000e+00> : vector<8x128xf32>
    %145 = tpu.matmul %137, %3, %cst_40 {dimension_numbers = #tpu.dot_dimension_numbers<[1], [0], [0], [1], [0, 0, 1, 1], [], []>} : vector<8x32xf32>, vector<32x128xf32>, vector<8x128xf32> -> vector<8x128xf32>
    %146 = arith.addf %144, %145 : vector<8x128xf32>
    %147 = vector.extract_strided_slice %146 {offsets = [0, 0], sizes = [8, 32], strides = [1, 1]} : vector<8x128xf32> to vector<8x32xf32>
    %148 = arith.negf %147 : vector<8x32xf32>
    %149 = math.exp %148 : vector<8x32xf32>
    %cst_41 = arith.constant 1.000000e+00 : f32
    %150 = vector.broadcast %cst_41 : f32 to vector<8x32xf32>
    %151 = arith.addf %150, %149 : vector<8x32xf32>
    %152 = arith.divf %150, %151 : vector<8x32xf32>
    %153 = vector.extract_strided_slice %146 {offsets = [0, 32], sizes = [8, 32], strides = [1, 1]} : vector<8x128xf32> to vector<8x32xf32>
    %154 = arith.negf %153 : vector<8x32xf32>
    %155 = math.exp %154 : vector<8x32xf32>
    %cst_42 = arith.constant 1.000000e+00 : f32
    %156 = vector.broadcast %cst_42 : f32 to vector<8x32xf32>
    %157 = arith.addf %156, %155 : vector<8x32xf32>
    %158 = arith.divf %156, %157 : vector<8x32xf32>
    %159 = vector.extract_strided_slice %146 {offsets = [0, 64], sizes = [8, 32], strides = [1, 1]} : vector<8x128xf32> to vector<8x32xf32>
    %160 = math.tanh %159 : vector<8x32xf32>
    %161 = vector.extract_strided_slice %146 {offsets = [0, 96], sizes = [8, 32], strides = [1, 1]} : vector<8x128xf32> to vector<8x32xf32>
    %162 = arith.negf %161 : vector<8x32xf32>
    %163 = math.exp %162 : vector<8x32xf32>
    %cst_43 = arith.constant 1.000000e+00 : f32
    %164 = vector.broadcast %cst_43 : f32 to vector<8x32xf32>
    %165 = arith.addf %164, %163 : vector<8x32xf32>
    %166 = arith.divf %164, %165 : vector<8x32xf32>
    %167 = arith.mulf %158, %135 : vector<8x32xf32>
    %168 = arith.mulf %152, %160 : vector<8x32xf32>
    %169 = arith.addf %167, %168 : vector<8x32xf32>
    %170 = math.tanh %169 : vector<8x32xf32>
    %171 = arith.mulf %166, %170 : vector<8x32xf32>
    %172 = arith.index_cast %c4_i32 : i32 to index
    %c0_44 = arith.constant 0 : index
    %c0_45 = arith.constant 0 : index
    %173 = vector.load %arg5[%172, %c0_44, %c0_45] : memref<8x8x32xf32, #tpu.memory_space<vmem>>, vector<1x8x32xf32>
    %174 = vector.shape_cast %173 : vector<1x8x32xf32> to vector<8x32xf32>
    %175 = vector.shape_cast %171 : vector<8x32xf32> to vector<1x8x32xf32>
    tpu.vector_store %arg5[%172, %c0_44, %c0_45], %175 {strides = array<i32>} : memref<8x8x32xf32, #tpu.memory_space<vmem>>, vector<1x8x32xf32>,
    %c5_i32 = arith.constant 5 : i32
    %176 = arith.index_cast %c5_i32 : i32 to index
    %c0_46 = arith.constant 0 : index
    %c0_47 = arith.constant 0 : index
    %177 = vector.load %arg1[%176, %c0_46, %c0_47] : memref<8x8x128xf32, #tpu.memory_space<vmem>>, vector<1x8x128xf32>
    %178 = vector.shape_cast %177 : vector<1x8x128xf32> to vector<8x128xf32>
    %cst_48 = arith.constant dense<0.000000e+00> : vector<8x128xf32>
    %179 = tpu.matmul %171, %3, %cst_48 {dimension_numbers = #tpu.dot_dimension_numbers<[1], [0], [0], [1], [0, 0, 1, 1], [], []>} : vector<8x32xf32>, vector<32x128xf32>, vector<8x128xf32> -> vector<8x128xf32>
    %180 = arith.addf %178, %179 : vector<8x128xf32>
    %181 = vector.extract_strided_slice %180 {offsets = [0, 0], sizes = [8, 32], strides = [1, 1]} : vector<8x128xf32> to vector<8x32xf32>
    %182 = arith.negf %181 : vector<8x32xf32>
    %183 = math.exp %182 : vector<8x32xf32>
    %cst_49 = arith.constant 1.000000e+00 : f32
    %184 = vector.broadcast %cst_49 : f32 to vector<8x32xf32>
    %185 = arith.addf %184, %183 : vector<8x32xf32>
    %186 = arith.divf %184, %185 : vector<8x32xf32>
    %187 = vector.extract_strided_slice %180 {offsets = [0, 32], sizes = [8, 32], strides = [1, 1]} : vector<8x128xf32> to vector<8x32xf32>
    %188 = arith.negf %187 : vector<8x32xf32>
    %189 = math.exp %188 : vector<8x32xf32>
    %cst_50 = arith.constant 1.000000e+00 : f32
    %190 = vector.broadcast %cst_50 : f32 to vector<8x32xf32>
    %191 = arith.addf %190, %189 : vector<8x32xf32>
    %192 = arith.divf %190, %191 : vector<8x32xf32>
    %193 = vector.extract_strided_slice %180 {offsets = [0, 64], sizes = [8, 32], strides = [1, 1]} : vector<8x128xf32> to vector<8x32xf32>
    %194 = math.tanh %193 : vector<8x32xf32>
    %195 = vector.extract_strided_slice %180 {offsets = [0, 96], sizes = [8, 32], strides = [1, 1]} : vector<8x128xf32> to vector<8x32xf32>
    %196 = arith.negf %195 : vector<8x32xf32>
    %197 = math.exp %196 : vector<8x32xf32>
    %cst_51 = arith.constant 1.000000e+00 : f32
    %198 = vector.broadcast %cst_51 : f32 to vector<8x32xf32>
    %199 = arith.addf %198, %197 : vector<8x32xf32>
    %200 = arith.divf %198, %199 : vector<8x32xf32>
    %201 = arith.mulf %192, %169 : vector<8x32xf32>
    %202 = arith.mulf %186, %194 : vector<8x32xf32>
    %203 = arith.addf %201, %202 : vector<8x32xf32>
    %204 = math.tanh %203 : vector<8x32xf32>
    %205 = arith.mulf %200, %204 : vector<8x32xf32>
    %206 = arith.index_cast %c5_i32 : i32 to index
    %c0_52 = arith.constant 0 : index
    %c0_53 = arith.constant 0 : index
    %207 = vector.load %arg5[%206, %c0_52, %c0_53] : memref<8x8x32xf32, #tpu.memory_space<vmem>>, vector<1x8x32xf32>
    %208 = vector.shape_cast %207 : vector<1x8x32xf32> to vector<8x32xf32>
    %209 = vector.shape_cast %205 : vector<8x32xf32> to vector<1x8x32xf32>
    tpu.vector_store %arg5[%206, %c0_52, %c0_53], %209 {strides = array<i32>} : memref<8x8x32xf32, #tpu.memory_space<vmem>>, vector<1x8x32xf32>,
    %c6_i32 = arith.constant 6 : i32
    %210 = arith.index_cast %c6_i32 : i32 to index
    %c0_54 = arith.constant 0 : index
    %c0_55 = arith.constant 0 : index
    %211 = vector.load %arg1[%210, %c0_54, %c0_55] : memref<8x8x128xf32, #tpu.memory_space<vmem>>, vector<1x8x128xf32>
    %212 = vector.shape_cast %211 : vector<1x8x128xf32> to vector<8x128xf32>
    %cst_56 = arith.constant dense<0.000000e+00> : vector<8x128xf32>
    %213 = tpu.matmul %205, %3, %cst_56 {dimension_numbers = #tpu.dot_dimension_numbers<[1], [0], [0], [1], [0, 0, 1, 1], [], []>} : vector<8x32xf32>, vector<32x128xf32>, vector<8x128xf32> -> vector<8x128xf32>
    %214 = arith.addf %212, %213 : vector<8x128xf32>
    %215 = vector.extract_strided_slice %214 {offsets = [0, 0], sizes = [8, 32], strides = [1, 1]} : vector<8x128xf32> to vector<8x32xf32>
    %216 = arith.negf %215 : vector<8x32xf32>
    %217 = math.exp %216 : vector<8x32xf32>
    %cst_57 = arith.constant 1.000000e+00 : f32
    %218 = vector.broadcast %cst_57 : f32 to vector<8x32xf32>
    %219 = arith.addf %218, %217 : vector<8x32xf32>
    %220 = arith.divf %218, %219 : vector<8x32xf32>
    %221 = vector.extract_strided_slice %214 {offsets = [0, 32], sizes = [8, 32], strides = [1, 1]} : vector<8x128xf32> to vector<8x32xf32>
    %222 = arith.negf %221 : vector<8x32xf32>
    %223 = math.exp %222 : vector<8x32xf32>
    %cst_58 = arith.constant 1.000000e+00 : f32
    %224 = vector.broadcast %cst_58 : f32 to vector<8x32xf32>
    %225 = arith.addf %224, %223 : vector<8x32xf32>
    %226 = arith.divf %224, %225 : vector<8x32xf32>
    %227 = vector.extract_strided_slice %214 {offsets = [0, 64], sizes = [8, 32], strides = [1, 1]} : vector<8x128xf32> to vector<8x32xf32>
    %228 = math.tanh %227 : vector<8x32xf32>
    %229 = vector.extract_strided_slice %214 {offsets = [0, 96], sizes = [8, 32], strides = [1, 1]} : vector<8x128xf32> to vector<8x32xf32>
    %230 = arith.negf %229 : vector<8x32xf32>
    %231 = math.exp %230 : vector<8x32xf32>
    %cst_59 = arith.constant 1.000000e+00 : f32
    %232 = vector.broadcast %cst_59 : f32 to vector<8x32xf32>
    %233 = arith.addf %232, %231 : vector<8x32xf32>
    %234 = arith.divf %232, %233 : vector<8x32xf32>
    %235 = arith.mulf %226, %203 : vector<8x32xf32>
    %236 = arith.mulf %220, %228 : vector<8x32xf32>
    %237 = arith.addf %235, %236 : vector<8x32xf32>
    %238 = math.tanh %237 : vector<8x32xf32>
    %239 = arith.mulf %234, %238 : vector<8x32xf32>
    %240 = arith.index_cast %c6_i32 : i32 to index
    %c0_60 = arith.constant 0 : index
    %c0_61 = arith.constant 0 : index
    %241 = vector.load %arg5[%240, %c0_60, %c0_61] : memref<8x8x32xf32, #tpu.memory_space<vmem>>, vector<1x8x32xf32>
    %242 = vector.shape_cast %241 : vector<1x8x32xf32> to vector<8x32xf32>
    %243 = vector.shape_cast %239 : vector<8x32xf32> to vector<1x8x32xf32>
    tpu.vector_store %arg5[%240, %c0_60, %c0_61], %243 {strides = array<i32>} : memref<8x8x32xf32, #tpu.memory_space<vmem>>, vector<1x8x32xf32>,
    %c7_i32 = arith.constant 7 : i32
    %244 = arith.index_cast %c7_i32 : i32 to index
    %c0_62 = arith.constant 0 : index
    %c0_63 = arith.constant 0 : index
    %245 = vector.load %arg1[%244, %c0_62, %c0_63] : memref<8x8x128xf32, #tpu.memory_space<vmem>>, vector<1x8x128xf32>
    %246 = vector.shape_cast %245 : vector<1x8x128xf32> to vector<8x128xf32>
    %cst_64 = arith.constant dense<0.000000e+00> : vector<8x128xf32>
    %247 = tpu.matmul %239, %3, %cst_64 {dimension_numbers = #tpu.dot_dimension_numbers<[1], [0], [0], [1], [0, 0, 1, 1], [], []>} : vector<8x32xf32>, vector<32x128xf32>, vector<8x128xf32> -> vector<8x128xf32>
    %248 = arith.addf %246, %247 : vector<8x128xf32>
    %249 = vector.extract_strided_slice %248 {offsets = [0, 0], sizes = [8, 32], strides = [1, 1]} : vector<8x128xf32> to vector<8x32xf32>
    %250 = arith.negf %249 : vector<8x32xf32>
    %251 = math.exp %250 : vector<8x32xf32>
    %cst_65 = arith.constant 1.000000e+00 : f32
    %252 = vector.broadcast %cst_65 : f32 to vector<8x32xf32>
    %253 = arith.addf %252, %251 : vector<8x32xf32>
    %254 = arith.divf %252, %253 : vector<8x32xf32>
    %255 = vector.extract_strided_slice %248 {offsets = [0, 32], sizes = [8, 32], strides = [1, 1]} : vector<8x128xf32> to vector<8x32xf32>
    %256 = arith.negf %255 : vector<8x32xf32>
    %257 = math.exp %256 : vector<8x32xf32>
    %cst_66 = arith.constant 1.000000e+00 : f32
    %258 = vector.broadcast %cst_66 : f32 to vector<8x32xf32>
    %259 = arith.addf %258, %257 : vector<8x32xf32>
    %260 = arith.divf %258, %259 : vector<8x32xf32>
    %261 = vector.extract_strided_slice %248 {offsets = [0, 64], sizes = [8, 32], strides = [1, 1]} : vector<8x128xf32> to vector<8x32xf32>
    %262 = math.tanh %261 : vector<8x32xf32>
    %263 = vector.extract_strided_slice %248 {offsets = [0, 96], sizes = [8, 32], strides = [1, 1]} : vector<8x128xf32> to vector<8x32xf32>
    %264 = arith.negf %263 : vector<8x32xf32>
    %265 = math.exp %264 : vector<8x32xf32>
    %cst_67 = arith.constant 1.000000e+00 : f32
    %266 = vector.broadcast %cst_67 : f32 to vector<8x32xf32>
    %267 = arith.addf %266, %265 : vector<8x32xf32>
    %268 = arith.divf %266, %267 : vector<8x32xf32>
    %269 = arith.mulf %260, %237 : vector<8x32xf32>
    %270 = arith.mulf %254, %262 : vector<8x32xf32>
    %271 = arith.addf %269, %270 : vector<8x32xf32>
    %272 = math.tanh %271 : vector<8x32xf32>
    %273 = arith.mulf %268, %272 : vector<8x32xf32>
    %274 = arith.index_cast %c7_i32 : i32 to index
    %c0_68 = arith.constant 0 : index
    %c0_69 = arith.constant 0 : index
    %275 = vector.load %arg5[%274, %c0_68, %c0_69] : memref<8x8x32xf32, #tpu.memory_space<vmem>>, vector<1x8x32xf32>
    %276 = vector.shape_cast %275 : vector<1x8x32xf32> to vector<8x32xf32>
    %277 = vector.shape_cast %273 : vector<8x32xf32> to vector<1x8x32xf32>
    tpu.vector_store %arg5[%274, %c0_68, %c0_69], %277 {strides = array<i32>} : memref<8x8x32xf32, #tpu.memory_space<vmem>>, vector<1x8x32xf32>,
    %c8_i32 = arith.constant 8 : i32
    %c0_70 = arith.constant 0 : index
    %c0_71 = arith.constant 0 : index
    %278 = vector.load %arg8[%c0_70, %c0_71] : memref<8x32xf32, #tpu.memory_space<vmem>>, vector<8x32xf32>
    tpu.vector_store %arg8[%c0_70, %c0_71], %273 {strides = array<i32>} : memref<8x32xf32, #tpu.memory_space<vmem>>, vector<8x32xf32>,
    %c0_72 = arith.constant 0 : index
    %c0_73 = arith.constant 0 : index
    %279 = vector.load %arg9[%c0_72, %c0_73] : memref<8x32xf32, #tpu.memory_space<vmem>>, vector<8x32xf32>
    tpu.vector_store %arg9[%c0_72, %c0_73], %271 {strides = array<i32>} : memref<8x32xf32, #tpu.memory_space<vmem>>, vector<8x32xf32>,
    %c1_i32_74 = arith.constant 1 : i32
    %280 = arith.cmpi eq, %arg0, %c1_i32_74 : i32
    %281 = arith.extui %280 : i1 to i32
    %c0_i32_75 = arith.constant 0 : i32
    %282 = arith.cmpi ne, %281, %c0_i32_75 : i32
    scf.if %282 {
      %c0_76 = arith.constant 0 : index
      %c0_77 = arith.constant 0 : index
      %283 = vector.load %arg6[%c0_76, %c0_77] : memref<8x32xf32, #tpu.memory_space<vmem>>, vector<8x32xf32>
      tpu.vector_store %arg6[%c0_76, %c0_77], %273 {strides = array<i32>} : memref<8x32xf32, #tpu.memory_space<vmem>>, vector<8x32xf32>,
      %c0_78 = arith.constant 0 : index
      %c0_79 = arith.constant 0 : index
      %284 = vector.load %arg7[%c0_78, %c0_79] : memref<8x32xf32, #tpu.memory_space<vmem>>, vector<8x32xf32>
      tpu.vector_store %arg7[%c0_78, %c0_79], %271 {strides = array<i32>} : memref<8x32xf32, #tpu.memory_space<vmem>>, vector<8x32xf32>,
    } else {
    }
    return
  }
  func.func @transform_0(%arg0: i32) -> (i32, i32, i32) {
    %c0_i32 = arith.constant 0 : i32
    %c0_i32_0 = arith.constant 0 : i32
    %c0_i32_1 = arith.constant 0 : i32
    return %arg0, %c0_i32, %c0_i32_0 : i32, i32, i32
  }
  func.func @transform_1(%arg0: i32) -> (i32, i32) {
    %c0_i32 = arith.constant 0 : i32
    %c0_i32_0 = arith.constant 0 : i32
    %c0_i32_1 = arith.constant 0 : i32
    return %c0_i32, %c0_i32_0 : i32, i32
  }
  func.func @transform_2(%arg0: i32) -> (i32, i32) {
    %c0_i32 = arith.constant 0 : i32
    %c0_i32_0 = arith.constant 0 : i32
    %c0_i32_1 = arith.constant 0 : i32
    return %c0_i32, %c0_i32_0 : i32, i32
  }
  func.func @transform_3(%arg0: i32) -> (i32, i32) {
    %c0_i32 = arith.constant 0 : i32
    %c0_i32_0 = arith.constant 0 : i32
    %c0_i32_1 = arith.constant 0 : i32
    return %c0_i32, %c0_i32_0 : i32, i32
  }
  func.func @transform_4(%arg0: i32) -> (i32, i32, i32) {
    %c0_i32 = arith.constant 0 : i32
    %c0_i32_0 = arith.constant 0 : i32
    %c0_i32_1 = arith.constant 0 : i32
    return %arg0, %c0_i32, %c0_i32_0 : i32, i32, i32
  }
  func.func @transform_5(%arg0: i32) -> (i32, i32) {
    %c0_i32 = arith.constant 0 : i32
    %c0_i32_0 = arith.constant 0 : i32
    %c0_i32_1 = arith.constant 0 : i32
    return %c0_i32, %c0_i32_0 : i32, i32
  }
  func.func @transform_6(%arg0: i32) -> (i32, i32) {
    %c0_i32 = arith.constant 0 : i32
    %c0_i32_0 = arith.constant 0 : i32
    %c0_i32_1 = arith.constant 0 : i32
    return %c0_i32, %c0_i32_0 : i32, i32
  }
}

</mosaic_0001>

<bundles_post_ra>
// kernel: tpu_custom_call.1
= control target key start
LH: loop header
LB: loop body
LE: loop exit
PB: predicated region body
PF: predicated region fallthrough
CT: control target
= control target key end

     0   :  { %12 = vsyncpa [#allocation5], 0  ;;  %s1835_s0 = inlined_call_operand.hbm [shape: f32[16,8,128], index: 0, kind: input, shape index: {}]   ;;  %s1836_s1 = inlined_call_operand.hbm [shape: f32[32,128], index: 1, kind: input, shape index: {}]   ;;  %s1837_s2 = inlined_call_operand.hbm [shape: f32[8,32], index: 2, kind: input, shape index: {}]   ;;  %s1838_s3 = inlined_call_operand.hbm [shape: f32[8,32], index: 3, kind: input, shape index: {}]   ;;  %s1839_s4 = inlined_call_operand.hbm [shape: f32[16,8,32], index: 4, kind: output, shape index: {0}]   ;;  %s1840_s5 = inlined_call_operand.hbm [shape: f32[8,32], index: 5, kind: output, shape index: {1}]   ;;  %s1841_s6 = inlined_call_operand.hbm [shape: f32[8,32], index: 6, kind: output, shape index: {2}]  }
   0x1   :  { %14 = vsyncpa [#allocation5 + $0x1], 0 }
   0x2   :  { %15 = vsyncpa [#allocation8], 0 }
   0x3   :  { %16 = vsyncpa [#allocation11], 0 }
   0x4   :  { %17 = vsyncpa [#allocation6], 0 }
   0x5   :  { %19 = vsyncpa [#allocation6 + $0x1], 0 }
   0x6   :  { %20 = vsyncpa [#allocation14], 0  ;;  %s1579_s21 = smov 0   ;;  %s1581_s22 = smov 0  }
   0x7   :  { %s1583_s23 = smov 0   ;;  %s1585_s24 = smov 0  }
   0x8 LB: > { %s1600_s25 = sadd.s32 4294967295, %s1530_s24   ;;  %s1056_s26 = sadd.s32 4294967294, %s1530_s24   ;;  %s1530_s24 = sphi %s1585_s24, %s1862_s24   ;;  %s1526_s23 = sphi %s1583_s23, %s1861_s23   ;;  %s1522_s22 = sphi %s1581_s22, %s1860_s22   ;;  %s1518_s21 = sphi %s1579_s21, %s1859_s21  }
   0x9   : > { %p46_p0 = scmp.ne.s32.totalorder %s1522_s22, %s1518_s21  ;;  %p47_p1 = scmp.eq.s32.totalorder %s1600_s25, 0 }
   0xa   : > { %p1844_p2 = scmp.eq.s32.totalorder %s1600_s25, 1  ;;  %p139_p3 = scmp.eq.s32.totalorder %s1056_s26, 1 }
   0xb   : > { %p1609_p4 = por %p47_p1, %p46_p0  ;;  %p1057_p5 = scmp.ge.s32.totalorder %s1530_s24, 1 }
   0xc   : > { %p1614_p6 = por %p139_p3, %p46_p0  ;;  %p188_p7 = scmp.lt.s32.totalorder %s1530_s24, 3 }
   0xd   : > { %s199_s7 = sshll.u32 %s1836_s1, 4  ;;  %s1532_s9 = smov [#allocation7]   ;;  %s200_s7 = int_to_ptr.hbm [resolvable:$true] %s199_s7 }
   0xe   : > { %p1623_p9 = pnand %p1057_p5, %p188_p7  ;;  %s201_s10 = sshll.u32 %s1532_s9, 4  ;;  %s202_s10 = int_to_ptr.vmem [resolvable:$true] %s201_s10 }
   0xf   : > { %s214_s14 = sshll.u32 %s1837_s2, 4  ;;  %s1842_s15 = smov 128   ;;  %s215_s14 = int_to_ptr.hbm [resolvable:$true] %s214_s14 }
  0x10   : > { %p1138_p10 = pneg %p1623_p9  ;;  %s1843_s16 = smov 8  }
  0x11   : > { %s1535_s17 = smov [#allocation9]   ;;  %s226_s26 = sshll.u32 %s1838_s3, 4  ;;  %s227_s26 = int_to_ptr.hbm [resolvable:$true] %s226_s26 }
  0x12   : > { %p1631_p11 = pnand %p1138_p10, %p47_p1  ;;  %s216_s18 = sshll.u32 %s1535_s17, 4  ;;  %s217_s18 = int_to_ptr.vmem [resolvable:$true] %s216_s18 }
  0x13   : > { %s1536_s29 = smov [#allocation10]   ;;  %p40_p0 = scmp.ne.s32.totalorder %s1526_s23, %s1522_s22 }
  0x14   : > { %1141 = dma.hbm_to_vmem [thread:$0]  (!%p1631_p11), %s200_s7, 512, %s202_s10, [#allocation8], %s1842_s15, %s1842_s15, %s1843_s16  }
  0x15   : > { %1144 = dma.hbm_to_vmem [thread:$0]  (!%p1631_p11), %s215_s14, 128, %s217_s18, [#allocation8]  }
  0x16   : > { %s228_s30 = sshll.u32 %s1536_s29, 4  ;;  %s1650_s7 = sadd.s32 1, %s1530_s24   ;;  %s229_s30 = int_to_ptr.vmem [resolvable:$true] %s228_s30 }
  0x17   : > { %1147 = dma.hbm_to_vmem [thread:$0]  (!%p1631_p11), %s227_s26, 128, %s229_s30, [#allocation11]  }
  0x18   : > { %s30_s9 = ssub.s32 %s1530_s24, %s1650_s7  ;;  %s33_s10 = sadd.s32 1, %s1526_s23 }
  0x19   : > { %p31_p13 = scmp.eq.s32.totalorder %s30_s9, 0  ;;  %p41_p3 = scmp.eq.s32.totalorder %s1530_s24, 0 }
  0x1a   : > { %p1665_p5 = por %p1844_p2, %p40_p0  ;;  %p1159_p7 = scmp.lt.s32.totalorder %s1530_s24, 2 }
  0x1b   : > { %s1661_s12 = scalar_select %p31_p13, %s1526_s23, %s33_s10  }
  0x1c   : > { %s239_s14 = sand.u32 1, %s1526_s23   ;;  %s1112_s17 = sshll.u32 %s1530_s24, 6 }
  0x1d   : > { %p42_p10 = por %p41_p3, %p40_p0  ;;  %s1062_s18 = sshll.u32 %s239_s14, 6 }
  0x1e   : > { %s248_s20 = scalar_lea.hbm %s1835_s0, %s1112_s17  ;;  %s243_s29 = scalar_lea.vmem [#allocation4], %s1062_s18 }
  0x1f   : > { %s249_s26 = sshll.u32 %s248_s20, 4  ;;  %s251_s30 = sshll.u32 %s243_s29, 4  ;;  %s250_s26 = int_to_ptr.hbm [resolvable:$true] %s249_s26  ;;  %s252_s30 = int_to_ptr.vmem [resolvable:$true] %s251_s30 }
  0x20   : > { %p1675_p11 = pnand %p1159_p7, %p42_p10  ;;  %s240_s10 = scalar_lea.sflag [#allocation5], %s239_s14 }
  0x21   : > { %s1366_s15 = sshra.s32 %s250_s26, 4  ;;  %s1373_s18 = scalar_lea.hbm %s1835_s0, 128  ;;  %s1367_s15 = int_to_ptr.hbm [resolvable:$true] %s1366_s15 }
  0x22   : > { %s1368_s16 = scalar_lea.hbm %s1367_s15, 64  ;;  %p1370_p0 = pneg %p1675_p11 }
  0x23   : > { %p1369_p13 = scmp.ne.s32.totalorder %s1367_s15, %s1368_s16  ;;  %p1374_p7 = scmp.lt.s32.totalorder %s1367_s15, %s1835_s0 }
  0x24   : > { %p1375_p10 = scmp.lt.s32.totalorder %s1373_s18, %s1368_s16 }
  0x25   : > { %p1371_p3 = pnand %p1370_p0, %p1369_p13 }
  0x26   : > { %p1376_p2 = por %p1375_p10, %p1374_p7 }
  0x27   : > { %p1372_p12 = pneg %p1371_p3 }
  0x29   : > { %p1377_p8 = pnand %p1376_p2, %p1372_p12 }
  0x2b   : > { %1380 = shalt.err (!%p1377_p8)
}
  0x2c   : > { %s1851_s14 = smov 8   ;;  %s1852_s29 = smov 128  }
  0x2d   : > { %1151 = dma.hbm_to_vmem [thread:$0]  (!%p1675_p11), %s250_s26, 1024, %s252_s30, %s240_s10, %s1852_s29, %s1852_s29, %s1851_s14  }
  0x2e   : > { %263 = sbr.rel (%p1623_p9) target bundleno = 4728 (0x1278), region = 36  ;;  %s1695_s17 = sand.u32 (!%p1623_p9), 1, %s1522_s22  }
  0x2f   : > { %s1066_s15 = sshll.u32 (!%p1623_p9), %s1695_s17, 6  ;;  %s266_s16 = scalar_lea.sflag (!%p1623_p9), [#allocation5], %s1695_s17 }
  0x30   : > { %s1699_s11 = scalar_lea.vmem (!%p1623_p9), [#allocation4], %s1066_s15 }
  0x33   : > { %1497 = dma.done.wait (%p1609_p4), %s266_s16, 1024  }
  0x34   : > { %1499 = vsyncadd (%p1609_p4), %s266_s16, 4294966272 }
  0x35   : > { %1501 = dma.done.wait (%p47_p1), [#allocation8], 640  }
  0x36   : > { %1503 = vsyncadd (%p47_p1), [#allocation8], 4294966656 }
  0x37   : > { %1505 = dma.done.wait (%p47_p1), [#allocation11], 128  }
  0x38   : > { %1507 = vsyncadd (%p47_p1), [#allocation11], 4294967168  ;;  %s1713_s8 = scalar_lea.vmem [#allocation12], %s1066_s15  ;;  %p1853_p2 = scmp.ne.s32.totalorder %s1600_s25, 0 }
  0x3a   : > { %319 = sbr.rel (%p1853_p2) target bundleno = 66 (0x42), region = 56 }
  0x3f   : > { %v320_v0 = vld [vmem:[#allocation9] sm:$0xff]  ;;  %vm321_vm0 = vcmask 261120   ;;  %v323_v1 = vld [vmem:[#allocation10] sm:$0xff] }
  0x40   : > { %322 = vst.msk [vmem:[#allocation2] sm:$0xff] %vm321_vm0, %v320_v0 }
  0x41   : > { %324 = vst.msk [vmem:[#allocation3] sm:$0xff] %vm321_vm0, %v323_v1 }
  0x42 PF: > { %v328_v2 = vld [vmem:[#allocation7 + $0x18] sm:$0xff]  ;;  %v327_v3 = vld [vmem:[#allocation7 + $0x10] sm:$0xff]  ;;  %v326_v4 = vld [vmem:[#allocation7 + $0x8] sm:$0xff]  ;;  %vm332_vm1 = vcmask 261120   ;;  %s1537_s27 = smov 64   ;;  %s1538_s26 = smov 32  }
  0x43   : > { %348 = vmatpush.msra.mxu0 %v328_v2  ;;  %419 = vmatpush.msra.mxu1 %v328_v2  ;;  %v325_v5 = vld [vmem:[#allocation7] sm:$0xff]  ;;  %v1074_v35 = vld [vmem:[%s1699_s11 + $0x8] sm:$0xff]  ;;  %v1078_v61 = vld [vmem:[%s1699_s11 + $0x10] sm:$0xff]  ;;  %s1539_s30 = smov 96   ;;  %p1102_p1 = scmp.ne.s32.totalorder %s1600_s25, 1 }
  0x44   : > { %487 = vmatpush.msra.mxu2 %v328_v2  ;;  %555 = vmatpush.msra.mxu3 %v328_v2  ;;  %v331_v7 = vld [vmem:[%s1699_s11] sm:$0xff] }
  0x45   : > { %349 = vmatpush.msra.mxu0 %v327_v3  ;;  %420 = vmatpush.msra.mxu1 %v327_v3 }
  0x46   : > { %488 = vmatpush.msra.mxu2 %v327_v3  ;;  %556 = vmatpush.msra.mxu3 %v327_v3 }
  0x47   : > { %350 = vmatpush.msra.mxu0 %v326_v4  ;;  %v329_v6 = vld [vmem:[#allocation2] sm:$0xff]  ;;  %421 = vmatpush.msra.mxu1 %v326_v4 }
  0x48   : > { %489 = vmatpush.msra.mxu2 %v326_v4  ;;  %557 = vmatpush.msra.mxu3 %v326_v4  ;;  %v330_v11 = vld [vmem:[#allocation3] sm:$0xff] }
  0x49   : > { %351 = vmatpush.msra.mxu0 %v325_v5  ;;  %422 = vmatpush.msra.mxu1 %v325_v5 }
  0x4a   : > { %1072 = vmatmul.msk.f32.vlgmr.msra.gmra.mxu0 %vm332_vm1, %v329_v6  ;;  %490 = vmatpush.msra.mxu2 %v325_v5 }
  0x4b   : > { %558 = vmatpush.msra.mxu3 %v325_v5  ;;  %623 = vmatpush.msrb.mxu0 %v328_v2 }
  0x4c   : > { %691 = vmatpush.msrb.mxu1 %v328_v2  ;;  %759 = vmatpush.msrb.mxu2 %v328_v2 }
  0x4d   : > { %624 = vmatpush.msrb.mxu0 %v327_v3  ;;  %827 = vmatpush.msrb.mxu3 %v328_v2 }
  0x4e   : > { %692 = vmatpush.msrb.mxu1 %v327_v3  ;;  %760 = vmatpush.msrb.mxu2 %v327_v3 }
  0x4f   : > { %625 = vmatpush.msrb.mxu0 %v326_v4  ;;  %828 = vmatpush.msrb.mxu3 %v327_v3 }
  0x50   : > { %693 = vmatpush.msrb.mxu1 %v326_v4  ;;  %761 = vmatpush.msrb.mxu2 %v326_v4 }
  0x51   : > { %626 = vmatpush.msrb.mxu0 %v325_v5  ;;  %829 = vmatpush.msrb.mxu3 %v326_v4 }
  0x52   : > { %694 = vmatpush.msrb.mxu1 %v325_v5  ;;  %762 = vmatpush.msrb.mxu2 %v325_v5 }
  0x53   : > { %830 = vmatpush.msrb.mxu3 %v325_v5 }
  0xc7   : > { %v353_v8 = vpop.f32.mrf.mxu0 }
  0xc8   : > { %v356_v9 = vadd.f32 %v353_v8, %v331_v7 }
  0xca   : > { %1212 = vtanh.f32 %v356_v9  ;;  %v1073_v12 = vmul.f32 -1.442695, %v356_v9 }
  0xcc   : > { %1214 = vpow2.f32 %v1073_v12 }
  0xd0   : > { %v1213_v10 = vpop.eup %1212 }
  0xd1   : > { %383 = vrot.lane.b32.xlu0 %v1213_v10, %s1537_s27 }
  0xd2   : > { %v1215_v13 = vpop.eup %1214 }
  0xd3   : > { %v360_v14 = vadd.f32 1.0, %v1215_v13 }
  0xd5   : > { %1216 = vrcp.f32 %v360_v14  ;;  %v372_v20 = vand.u32 2147483648, %v360_v14  ;;  %vm366_vm3 = vweird.f32 %v360_v14  ;;  %v370_v21 = vand.u32 2147483647, %v360_v14 }
  0xd7   : > { %v373_v23 = vor.u32 1.1754944e-38, %v372_v20  ;;  %vm371_vm5 = vcmp.eq.f32.partialorder %v370_v21, 8.507059e+37 }
  0xd9   : > { %378 = vrot.lane.b32.xlu0 %v330_v11, %s1538_s26 }
  0xdb   : > { %v1217_v15 = vpop.eup %1216 }
  0xdc   : > { %v362_v16 = vmul.f32 %v1217_v15, %v360_v14  ;;  %vm367_vm2 = vweird.f32 %v1217_v15 }
  0xdd   : > { %vm368_vm4 = vmor %vm366_vm3, %vm367_vm2 }
  0xde   : > { %v363_v17 = vsub.f32 1.0, %v362_v16 }
  0xe0   : > { %v364_v18 = vmul.f32 %v1217_v15, %v363_v17 }
  0xe2   : > { %v365_v19 = vadd.f32 %v1217_v15, %v364_v18 }
  0xe4   : > { %v369_v22 = vsel %vm368_vm4, %v1217_v15, %v365_v19 }
  0xe5   : > { %v374_v25 = vsel %vm371_vm5, %v373_v23, %v369_v22  ;;  %v1082_v23 = vld [vmem:[%s1699_s11 + $0x18] sm:$0xff] }
 0x143   : > { %v384_v24 = vpop.permute.xlu0 %383 }
 0x144   : > { %v386_v26 = vmul.f32 %v384_v24, %v374_v25 }
 0x146   : > { %388 = vrot.lane.b32.xlu1 %v386_v26, %s1538_s26 }
 0x14b   : > { %v379_v27 = vpop.permute.xlu0 %378 }
 0x14c   : > { %v381_v28 = vmul.f32 %v379_v27, %v374_v25 }
 0x1b8   : > { %v389_v29 = vpop.permute.xlu1 %388 }
 0x1b9   : > { %v391_v30 = vadd.f32 %v389_v29, %v381_v28 }
 0x1bb   : > { %1218 = vtanh.f32 %v391_v30 }
 0x1c1   : > { %v1219_v31 = vpop.eup %1218 }
 0x1c2   : > { %394 = vrot.lane.b32.xlu1 %v1219_v31, %s1537_s27 }
 0x234   : > { %v395_v32 = vpop.permute.xlu1 %394 }
 0x235   : > { %v397_v33 = vmul.f32 %v395_v32, %v374_v25 }
 0x237   : > { %399 = vrot.lane.b32.xlu2 %v397_v33, %s1538_s26 }
 0x291   : > { %v400_v34 = vpop.permute.xlu2 %399 }
 0x292   : > { %402 = vst.msk [vmem:[%s1713_s8] sm:$0xff] %vm332_vm1, %v400_v34  ;;  %1075 = vmatmul.msk.f32.vlgmr.msra.gmra.mxu1 %vm332_vm1, %v400_v34 }
 0x30f   : > { %v424_v36 = vpop.f32.mrf.mxu1 }
 0x310   : > { %v427_v37 = vadd.f32 %v1074_v35, %v424_v36 }
 0x312   : > { %1220 = vtanh.f32 %v427_v37  ;;  %v1076_v39 = vmul.f32 -1.442695, %v427_v37 }
 0x314   : > { %1222 = vpow2.f32 %v1076_v39 }
 0x318   : > { %v1221_v38 = vpop.eup %1220 }
 0x319   : > { %450 = vrot.lane.b32.xlu2 %v1221_v38, %s1537_s27 }
 0x31a   : > { %v1223_v40 = vpop.eup %1222 }
 0x31b   : > { %v431_v41 = vadd.f32 1.0, %v1223_v40 }
 0x31d   : > { %1224 = vrcp.f32 %v431_v41  ;;  %v443_v47 = vand.u32 2147483648, %v431_v41  ;;  %vm437_vm7 = vweird.f32 %v431_v41  ;;  %v441_v48 = vand.u32 2147483647, %v431_v41 }
 0x31f   : > { %v444_v50 = vor.u32 1.1754944e-38, %v443_v47  ;;  %vm442_vm9 = vcmp.eq.f32.partialorder %v441_v48, 8.507059e+37 }
 0x323   : > { %v1225_v42 = vpop.eup %1224 }
 0x324   : > { %v433_v43 = vmul.f32 %v1225_v42, %v431_v41  ;;  %vm438_vm6 = vweird.f32 %v1225_v42 }
 0x325   : > { %vm439_vm8 = vmor %vm437_vm7, %vm438_vm6 }
 0x326   : > { %v434_v44 = vsub.f32 1.0, %v433_v43 }
 0x328   : > { %v435_v45 = vmul.f32 %v1225_v42, %v434_v44 }
 0x32a   : > { %v436_v46 = vadd.f32 %v1225_v42, %v435_v45 }
 0x32c   : > { %v440_v49 = vsel %vm439_vm8, %v1225_v42, %v436_v46 }
 0x32d   : > { %v445_v52 = vsel %vm442_vm9, %v444_v50, %v440_v49  ;;  %v1086_v49 = vld [vmem:[%s1699_s11 + $0x20] sm:$0xff] }
 0x32e   : > { %v448_v54 = vmul.f32 %v445_v52, %v391_v30 }
 0x373   : > { %v451_v51 = vpop.permute.xlu2 %450 }
 0x374   : > { %v453_v53 = vmul.f32 %v451_v51, %v445_v52 }
 0x376   : > { %455 = vrot.lane.b32.xlu0 %v453_v53, %s1538_s26 }
 0x3e8   : > { %v456_v55 = vpop.permute.xlu0 %455 }
 0x3e9   : > { %v458_v56 = vadd.f32 %v456_v55, %v448_v54 }
 0x3eb   : > { %1226 = vtanh.f32 %v458_v56 }
 0x3f1   : > { %v1227_v57 = vpop.eup %1226 }
 0x3f2   : > { %461 = vrot.lane.b32.xlu1 %v1227_v57, %s1537_s27 }
 0x464   : > { %v462_v58 = vpop.permute.xlu1 %461 }
 0x465   : > { %v464_v59 = vmul.f32 %v462_v58, %v445_v52 }
 0x467   : > { %466 = vrot.lane.b32.xlu2 %v464_v59, %s1538_s26 }
 0x4c1   : > { %v467_v60 = vpop.permute.xlu2 %466 }
 0x4c2   : > { %1077 = vst.msk [vmem:[%s1713_s8 + $0x8] sm:$0xff] %vm332_vm1, %v467_v60  ;;  %1079 = vmatmul.msk.f32.vlgmr.msra.gmra.mxu2 %vm332_vm1, %v467_v60 }
 0x545   : > { %v492_v62 = vpop.f32.mrf.mxu2 }
 0x546   : > { %v495_v63 = vadd.f32 %v1078_v61, %v492_v62 }
 0x548   : > { %1228 = vtanh.f32 %v495_v63  ;;  %v1080_v1 = vmul.f32 -1.442695, %v495_v63 }
 0x54a   : > { %1230 = vpow2.f32 %v1080_v1 }
 0x54e   : > { %v1229_v0 = vpop.eup %1228 }
 0x54f   : > { %518 = vrot.lane.b32.xlu0 %v1229_v0, %s1537_s27 }
 0x550   : > { %v1231_v2 = vpop.eup %1230 }
 0x551   : > { %v499_v3 = vadd.f32 1.0, %v1231_v2 }
 0x553   : > { %1232 = vrcp.f32 %v499_v3  ;;  %v511_v9 = vand.u32 2147483648, %v499_v3  ;;  %vm505_vm11 = vweird.f32 %v499_v3  ;;  %v509_v10 = vand.u32 2147483647, %v499_v3 }
 0x555   : > { %v512_v12 = vor.u32 1.1754944e-38, %v511_v9  ;;  %vm510_vm13 = vcmp.eq.f32.partialorder %v509_v10, 8.507059e+37 }
 0x559   : > { %v1233_v4 = vpop.eup %1232 }
 0x55a   : > { %v501_v5 = vmul.f32 %v1233_v4, %v499_v3  ;;  %vm506_vm10 = vweird.f32 %v1233_v4 }
 0x55b   : > { %vm507_vm12 = vmor %vm505_vm11, %vm506_vm10 }
 0x55c   : > { %v502_v6 = vsub.f32 1.0, %v501_v5 }
 0x55e   : > { %v503_v7 = vmul.f32 %v1233_v4, %v502_v6 }
 0x560   : > { %v504_v8 = vadd.f32 %v1233_v4, %v503_v7 }
 0x562   : > { %v508_v11 = vsel %vm507_vm12, %v1233_v4, %v504_v8 }
 0x563   : > { %v513_v14 = vsel %vm510_vm13, %v512_v12, %v508_v11  ;;  %v1090_v11 = vld [vmem:[%s1699_s11 + $0x28] sm:$0xff] }
 0x564   : > { %v516_v16 = vmul.f32 %v513_v14, %v458_v56 }
 0x5c1   : > { %v519_v13 = vpop.permute.xlu0 %518 }
 0x5c2   : > { %v521_v15 = vmul.f32 %v519_v13, %v513_v14 }
 0x5c4   : > { %523 = vrot.lane.b32.xlu1 %v521_v15, %s1538_s26 }
 0x636   : > { %v524_v17 = vpop.permute.xlu1 %523 }
 0x637   : > { %v526_v18 = vadd.f32 %v524_v17, %v516_v16 }
 0x639   : > { %1234 = vtanh.f32 %v526_v18 }
 0x63f   : > { %v1235_v19 = vpop.eup %1234 }
 0x640   : > { %529 = vrot.lane.b32.xlu2 %v1235_v19, %s1537_s27 }
 0x69a   : > { %v530_v20 = vpop.permute.xlu2 %529 }
 0x69b   : > { %v532_v21 = vmul.f32 %v530_v20, %v513_v14 }
 0x69d   : > { %534 = vrot.lane.b32.xlu0 %v532_v21, %s1538_s26 }
 0x70f   : > { %v535_v22 = vpop.permute.xlu0 %534 }
 0x710   : > { %1081 = vst.msk [vmem:[%s1713_s8 + $0x10] sm:$0xff] %vm332_vm1, %v535_v22  ;;  %1083 = vmatmul.msk.f32.vlgmr.msra.gmra.mxu3 %vm332_vm1, %v535_v22 }
 0x793   : > { %v560_v24 = vpop.f32.mrf.mxu3 }
 0x794   : > { %v563_v25 = vadd.f32 %v1082_v23, %v560_v24 }
 0x796   : > { %1236 = vtanh.f32 %v563_v25  ;;  %v1084_v27 = vmul.f32 -1.442695, %v563_v25 }
 0x798   : > { %1238 = vpow2.f32 %v1084_v27 }
 0x79c   : > { %v1237_v26 = vpop.eup %1236 }
 0x79d   : > { %586 = vrot.lane.b32.xlu1 %v1237_v26, %s1537_s27 }
 0x79e   : > { %v1239_v28 = vpop.eup %1238 }
 0x79f   : > { %v567_v29 = vadd.f32 1.0, %v1239_v28 }
 0x7a1   : > { %1240 = vrcp.f32 %v567_v29  ;;  %v579_v35 = vand.u32 2147483648, %v567_v29  ;;  %vm573_vm15 = vweird.f32 %v567_v29  ;;  %v577_v36 = vand.u32 2147483647, %v567_v29 }
 0x7a3   : > { %v580_v38 = vor.u32 1.1754944e-38, %v579_v35  ;;  %vm578_vm2 = vcmp.eq.f32.partialorder %v577_v36, 8.507059e+37 }
 0x7a7   : > { %v1241_v30 = vpop.eup %1240 }
 0x7a8   : > { %v569_v31 = vmul.f32 %v1241_v30, %v567_v29  ;;  %vm574_vm14 = vweird.f32 %v1241_v30 }
 0x7a9   : > { %vm575_vm0 = vmor %vm573_vm15, %vm574_vm14 }
 0x7aa   : > { %v570_v32 = vsub.f32 1.0, %v569_v31 }
 0x7ac   : > { %v571_v33 = vmul.f32 %v1241_v30, %v570_v32 }
 0x7ae   : > { %v572_v34 = vadd.f32 %v1241_v30, %v571_v33 }
 0x7b0   : > { %v576_v37 = vsel %vm575_vm0, %v1241_v30, %v572_v34 }
 0x7b1   : > { %v581_v40 = vsel %vm578_vm2, %v580_v38, %v576_v37  ;;  %v1094_v37 = vld [vmem:[%s1699_s11 + $0x30] sm:$0xff] }
 0x7b2   : > { %v584_v42 = vmul.f32 %v581_v40, %v526_v18 }
 0x80f   : > { %v587_v39 = vpop.permute.xlu1 %586 }
 0x810   : > { %v589_v41 = vmul.f32 %v587_v39, %v581_v40 }
 0x812   : > { %591 = vrot.lane.b32.xlu2 %v589_v41, %s1538_s26 }
 0x86c   : > { %v592_v43 = vpop.permute.xlu2 %591 }
 0x86d   : > { %v594_v44 = vadd.f32 %v592_v43, %v584_v42 }
 0x86f   : > { %1242 = vtanh.f32 %v594_v44 }
 0x875   : > { %v1243_v45 = vpop.eup %1242 }
 0x876   : > { %597 = vrot.lane.b32.xlu0 %v1243_v45, %s1537_s27 }
 0x8e8   : > { %v598_v46 = vpop.permute.xlu0 %597 }
 0x8e9   : > { %v600_v47 = vmul.f32 %v598_v46, %v581_v40 }
 0x8eb   : > { %602 = vrot.lane.b32.xlu1 %v600_v47, %s1538_s26 }
 0x95d   : > { %v603_v48 = vpop.permute.xlu1 %602 }
 0x95e   : > { %1085 = vst.msk [vmem:[%s1713_s8 + $0x18] sm:$0xff] %vm332_vm1, %v603_v48  ;;  %1087 = vmatmul.msk.f32.vlgmr.msrb.gmra.mxu0 %vm332_vm1, %v603_v48 }
 0x9db   : > { %v628_v50 = vpop.f32.mrf.mxu0 }
 0x9dc   : > { %v631_v51 = vadd.f32 %v1086_v49, %v628_v50 }
 0x9de   : > { %1244 = vtanh.f32 %v631_v51  ;;  %v1088_v53 = vmul.f32 -1.442695, %v631_v51 }
 0x9e0   : > { %1246 = vpow2.f32 %v1088_v53 }
 0x9e4   : > { %v1245_v52 = vpop.eup %1244 }
 0x9e5   : > { %654 = vrot.lane.b32.xlu2 %v1245_v52, %s1537_s27 }
 0x9e6   : > { %v1247_v54 = vpop.eup %1246 }
 0x9e7   : > { %v635_v55 = vadd.f32 1.0, %v1247_v54 }
 0x9e9   : > { %1248 = vrcp.f32 %v635_v55  ;;  %v647_v61 = vand.u32 2147483648, %v635_v55  ;;  %vm641_vm4 = vweird.f32 %v635_v55  ;;  %v645_v62 = vand.u32 2147483647, %v635_v55 }
 0x9eb   : > { %v648_v0 = vor.u32 1.1754944e-38, %v647_v61  ;;  %vm646_vm6 = vcmp.eq.f32.partialorder %v645_v62, 8.507059e+37 }
 0x9ef   : > { %v1249_v56 = vpop.eup %1248 }
 0x9f0   : > { %v637_v57 = vmul.f32 %v1249_v56, %v635_v55  ;;  %vm642_vm3 = vweird.f32 %v1249_v56 }
 0x9f1   : > { %vm643_vm5 = vmor %vm641_vm4, %vm642_vm3 }
 0x9f2   : > { %v638_v58 = vsub.f32 1.0, %v637_v57 }
 0x9f4   : > { %v639_v59 = vmul.f32 %v1249_v56, %v638_v58 }
 0x9f6   : > { %v640_v60 = vadd.f32 %v1249_v56, %v639_v59 }
 0x9f8   : > { %v644_v63 = vsel %vm643_vm5, %v1249_v56, %v640_v60 }
 0x9f9   : > { %v649_v2 = vsel %vm646_vm6, %v648_v0, %v644_v63  ;;  %v1098_v63 = vld [vmem:[%s1699_s11 + $0x38] sm:$0xff] }
 0x9fa   : > { %v652_v4 = vmul.f32 %v649_v2, %v594_v44 }
 0xa3f   : > { %v655_v1 = vpop.permute.xlu2 %654 }
 0xa40   : > { %v657_v3 = vmul.f32 %v655_v1, %v649_v2 }
 0xa42   : > { %659 = vrot.lane.b32.xlu0 %v657_v3, %s1538_s26 }
 0xab4   : > { %v660_v5 = vpop.permute.xlu0 %659 }
 0xab5   : > { %v662_v6 = vadd.f32 %v660_v5, %v652_v4 }
 0xab7   : > { %1250 = vtanh.f32 %v662_v6 }
 0xabd   : > { %v1251_v7 = vpop.eup %1250 }
 0xabe   : > { %665 = vrot.lane.b32.xlu1 %v1251_v7, %s1537_s27 }
 0xb30   : > { %v666_v8 = vpop.permute.xlu1 %665 }
 0xb31   : > { %v668_v9 = vmul.f32 %v666_v8, %v649_v2 }
 0xb33   : > { %670 = vrot.lane.b32.xlu2 %v668_v9, %s1538_s26 }
 0xb8d   : > { %v671_v10 = vpop.permute.xlu2 %670 }
 0xb8e   : > { %1089 = vst.msk [vmem:[%s1713_s8 + $0x20] sm:$0xff] %vm332_vm1, %v671_v10  ;;  %1091 = vmatmul.msk.f32.vlgmr.msrb.gmra.mxu1 %vm332_vm1, %v671_v10 }
 0xc0b   : > { %v696_v12 = vpop.f32.mrf.mxu1 }
 0xc0c   : > { %v699_v13 = vadd.f32 %v1090_v11, %v696_v12 }
 0xc0e   : > { %1252 = vtanh.f32 %v699_v13  ;;  %v1092_v15 = vmul.f32 -1.442695, %v699_v13 }
 0xc10   : > { %1254 = vpow2.f32 %v1092_v15 }
 0xc14   : > { %v1253_v14 = vpop.eup %1252 }
 0xc15   : > { %722 = vrot.lane.b32.xlu0 %v1253_v14, %s1537_s27 }
 0xc16   : > { %v1255_v16 = vpop.eup %1254 }
 0xc17   : > { %v703_v17 = vadd.f32 1.0, %v1255_v16 }
 0xc19   : > { %1256 = vrcp.f32 %v703_v17  ;;  %v715_v23 = vand.u32 2147483648, %v703_v17  ;;  %vm709_vm8 = vweird.f32 %v703_v17  ;;  %v713_v24 = vand.u32 2147483647, %v703_v17 }
 0xc1b   : > { %v716_v26 = vor.u32 1.1754944e-38, %v715_v23  ;;  %vm714_vm10 = vcmp.eq.f32.partialorder %v713_v24, 8.507059e+37 }
 0xc1f   : > { %v1257_v18 = vpop.eup %1256 }
 0xc20   : > { %v705_v19 = vmul.f32 %v1257_v18, %v703_v17  ;;  %vm710_vm7 = vweird.f32 %v1257_v18 }
 0xc21   : > { %vm711_vm9 = vmor %vm709_vm8, %vm710_vm7 }
 0xc22   : > { %v706_v20 = vsub.f32 1.0, %v705_v19 }
 0xc24   : > { %v707_v21 = vmul.f32 %v1257_v18, %v706_v20 }
 0xc26   : > { %v708_v22 = vadd.f32 %v1257_v18, %v707_v21 }
 0xc28   : > { %v712_v25 = vsel %vm711_vm9, %v1257_v18, %v708_v22 }
 0xc29   : > { %v717_v28 = vsel %vm714_vm10, %v716_v26, %v712_v25 }
 0xc2a   : > { %v720_v30 = vmul.f32 %v717_v28, %v662_v6 }
 0xc87   : > { %v723_v27 = vpop.permute.xlu0 %722 }
 0xc88   : > { %v725_v29 = vmul.f32 %v723_v27, %v717_v28 }
 0xc8a   : > { %727 = vrot.lane.b32.xlu1 %v725_v29, %s1538_s26 }
 0xcfc   : > { %v728_v31 = vpop.permute.xlu1 %727 }
 0xcfd   : > { %v730_v32 = vadd.f32 %v728_v31, %v720_v30 }
 0xcff   : > { %1258 = vtanh.f32 %v730_v32 }
 0xd05   : > { %v1259_v33 = vpop.eup %1258 }
 0xd06   : > { %733 = vrot.lane.b32.xlu2 %v1259_v33, %s1537_s27 }
 0xd60   : > { %v734_v34 = vpop.permute.xlu2 %733 }
 0xd61   : > { %v736_v35 = vmul.f32 %v734_v34, %v717_v28 }
 0xd63   : > { %738 = vrot.lane.b32.xlu0 %v736_v35, %s1538_s26 }
 0xdd5   : > { %v739_v36 = vpop.permute.xlu0 %738 }
 0xdd6   : > { %1093 = vst.msk [vmem:[%s1713_s8 + $0x28] sm:$0xff] %vm332_vm1, %v739_v36  ;;  %1095 = vmatmul.msk.f32.vlgmr.msrb.gmra.mxu2 %vm332_vm1, %v739_v36 }
 0xe59   : > { %v764_v38 = vpop.f32.mrf.mxu2 }
 0xe5a   : > { %v767_v39 = vadd.f32 %v1094_v37, %v764_v38 }
 0xe5c   : > { %1260 = vtanh.f32 %v767_v39  ;;  %v1096_v41 = vmul.f32 -1.442695, %v767_v39 }
 0xe5e   : > { %1262 = vpow2.f32 %v1096_v41 }
 0xe62   : > { %v1261_v40 = vpop.eup %1260 }
 0xe63   : > { %790 = vrot.lane.b32.xlu1 %v1261_v40, %s1537_s27 }
 0xe64   : > { %v1263_v42 = vpop.eup %1262 }
 0xe65   : > { %v771_v43 = vadd.f32 1.0, %v1263_v42 }
 0xe67   : > { %1264 = vrcp.f32 %v771_v43  ;;  %v783_v49 = vand.u32 2147483648, %v771_v43  ;;  %vm777_vm12 = vweird.f32 %v771_v43  ;;  %v781_v50 = vand.u32 2147483647, %v771_v43 }
 0xe69   : > { %v784_v52 = vor.u32 1.1754944e-38, %v783_v49  ;;  %vm782_vm14 = vcmp.eq.f32.partialorder %v781_v50, 8.507059e+37 }
 0xe6d   : > { %v1265_v44 = vpop.eup %1264 }
 0xe6e   : > { %v773_v45 = vmul.f32 %v1265_v44, %v771_v43  ;;  %vm778_vm11 = vweird.f32 %v1265_v44 }
 0xe6f   : > { %vm779_vm13 = vmor %vm777_vm12, %vm778_vm11 }
 0xe70   : > { %v774_v46 = vsub.f32 1.0, %v773_v45 }
 0xe72   : > { %v775_v47 = vmul.f32 %v1265_v44, %v774_v46 }
 0xe74   : > { %v776_v48 = vadd.f32 %v1265_v44, %v775_v47 }
 0xe76   : > { %v780_v51 = vsel %vm779_vm13, %v1265_v44, %v776_v48 }
 0xe77   : > { %v785_v54 = vsel %vm782_vm14, %v784_v52, %v780_v51 }
 0xe78   : > { %v788_v56 = vmul.f32 %v785_v54, %v730_v32 }
 0xed5   : > { %v791_v53 = vpop.permute.xlu1 %790 }
 0xed6   : > { %v793_v55 = vmul.f32 %v791_v53, %v785_v54 }
 0xed8   : > { %795 = vrot.lane.b32.xlu2 %v793_v55, %s1538_s26 }
 0xf32   : > { %v796_v57 = vpop.permute.xlu2 %795 }
 0xf33   : > { %v798_v58 = vadd.f32 %v796_v57, %v788_v56 }
 0xf35   : > { %1266 = vtanh.f32 %v798_v58 }
 0xf3b   : > { %v1267_v59 = vpop.eup %1266 }
 0xf3c   : > { %801 = vrot.lane.b32.xlu0 %v1267_v59, %s1537_s27 }
 0xfae   : > { %v802_v60 = vpop.permute.xlu0 %801 }
 0xfaf   : > { %v804_v61 = vmul.f32 %v802_v60, %v785_v54 }
 0xfb1   : > { %806 = vrot.lane.b32.xlu1 %v804_v61, %s1538_s26 }
0x1023   : > { %v807_v62 = vpop.permute.xlu1 %806 }
0x1024   : > { %1097 = vst.msk [vmem:[%s1713_s8 + $0x30] sm:$0xff] %vm332_vm1, %v807_v62  ;;  %1099 = vmatmul.msk.f32.vlgmr.msrb.gmra.mxu3 %vm332_vm1, %v807_v62 }
0x10a7   : > { %v832_v0 = vpop.f32.mrf.mxu3 }
0x10a8   : > { %v835_v1 = vadd.f32 %v1098_v63, %v832_v0 }
0x10aa   : > { %1268 = vtanh.f32 %v835_v1  ;;  %v1100_v3 = vmul.f32 -1.442695, %v835_v1 }
0x10ac   : > { %1270 = vpow2.f32 %v1100_v3 }
0x10b0   : > { %v1269_v2 = vpop.eup %1268 }
0x10b1   : > { %858 = vrot.lane.b32.xlu2 %v1269_v2, %s1537_s27 }
0x10b2   : > { %v1271_v4 = vpop.eup %1270 }
0x10b3   : > { %v839_v5 = vadd.f32 1.0, %v1271_v4 }
0x10b5   : > { %1272 = vrcp.f32 %v839_v5  ;;  %v851_v11 = vand.u32 2147483648, %v839_v5  ;;  %vm845_vm0 = vweird.f32 %v839_v5  ;;  %v849_v12 = vand.u32 2147483647, %v839_v5 }
0x10b7   : > { %v852_v14 = vor.u32 1.1754944e-38, %v851_v11  ;;  %vm850_vm3 = vcmp.eq.f32.partialorder %v849_v12, 8.507059e+37 }
0x10bb   : > { %v1273_v6 = vpop.eup %1272 }
0x10bc   : > { %v841_v7 = vmul.f32 %v1273_v6, %v839_v5  ;;  %vm846_vm15 = vweird.f32 %v1273_v6 }
0x10bd   : > { %vm847_vm2 = vmor %vm845_vm0, %vm846_vm15 }
0x10be   : > { %v842_v8 = vsub.f32 1.0, %v841_v7 }
0x10c0   : > { %v843_v9 = vmul.f32 %v1273_v6, %v842_v8 }
0x10c2   : > { %v844_v10 = vadd.f32 %v1273_v6, %v843_v9 }
0x10c4   : > { %v848_v13 = vsel %vm847_vm2, %v1273_v6, %v844_v10 }
0x10c5   : > { %v853_v16 = vsel %vm850_vm3, %v852_v14, %v848_v13 }
0x10c6   : > { %v856_v18 = vmul.f32 %v853_v16, %v798_v58 }
0x110b   : > { %v859_v15 = vpop.permute.xlu2 %858 }
0x110c   : > { %v861_v17 = vmul.f32 %v859_v15, %v853_v16 }
0x110e   : > { %863 = vrot.lane.b32.xlu0 %v861_v17, %s1538_s26 }
0x1180   : > { %v864_v19 = vpop.permute.xlu0 %863 }
0x1181   : > { %v866_v20 = vadd.f32 %v864_v19, %v856_v18 }
0x1183   : > { %1274 = vtanh.f32 %v866_v20  ;;  %881 = vrot.lane.b32.xlu0 %v866_v20, %s1539_s30 }
0x1189   : > { %v1275_v21 = vpop.eup %1274 }
0x118a   : > { %869 = vrot.lane.b32.xlu1 %v1275_v21, %s1537_s27 }
0x11f5   : > { %v882_v22 = vpop.permute.xlu0 %881 }
0x11f6   : > { %884 = vst.msk [vmem:[#allocation3] sm:$0xff] %vm332_vm1, %v882_v22 }
0x11fc   : > { %v870_v23 = vpop.permute.xlu1 %869 }
0x11fd   : > { %v872_v24 = vmul.f32 %v870_v23, %v853_v16 }
0x11ff   : > { %874 = vrot.lane.b32.xlu2 %v872_v24, %s1538_s26 }
0x1257   : > { %888 = sbr.rel (%p1102_p1) target bundleno = 4702 (0x125e), region = 60 }
0x1259   : > { %v875_v25 = vpop.permute.xlu2 %874 }
0x125a   : > { %1101 = vst.msk [vmem:[%s1713_s8 + $0x38] sm:$0xff] %vm332_vm1, %v875_v25 }
0x125b   : > { %879 = vst.msk [vmem:[#allocation2] sm:$0xff] %vm332_vm1, %v875_v25 }
0x125c   : > { %889 = vst.msk [vmem:[#allocation13] sm:$0xff] %vm332_vm1, %v875_v25 }
0x125d   : > { %890 = vst.msk [vmem:[#allocation15] sm:$0xff] %vm332_vm1, %v882_v22 }
0x125e PF: > { %s921_s18 = sshll.u32 %s1840_s5, 4  ;;  %s1540_s19 = smov [#allocation13]   ;;  %s922_s18 = int_to_ptr.hbm [resolvable:$true] %s921_s18 }
0x125f   : > { %s919_s20 = sshll.u32 %s1540_s19, 4  ;;  %p1854_p4 = scmp.eq.s32.totalorder %s1600_s25, 1  ;;  %s920_s20 = int_to_ptr.vmem [resolvable:$true] %s919_s20 }
0x1260   : > { %s1113_s14 = sshll.u32 %s1600_s25, 6  ;;  %s904_s29 = sshll.u32 %s1713_s8, 4  ;;  %s905_s29 = int_to_ptr.vmem [resolvable:$true] %s904_s29 }
0x1261   : > { %1130 = dma.vmem_to_hbm [thread:$0]  (%p1854_p4), %s920_s20, 128, %s922_s18, [#allocation14]  }
0x1262   : > { %s903_s11 = scalar_lea.hbm %s1839_s4, %s1113_s14  ;;  %s892_s26 = scalar_lea.sflag [#allocation6], %s1695_s17 }
0x1263   : > { %s906_s27 = sshll.u32 %s903_s11, 4  ;;  %s1444_s18 = scalar_lea.hbm %s1839_s4, 128  ;;  %s907_s27 = int_to_ptr.hbm [resolvable:$true] %s906_s27 }
0x1264   : > { %s1438_s30 = sshra.s32 %s907_s27, 4  ;;  %s1439_s30 = int_to_ptr.hbm [resolvable:$true] %s1438_s30 }
0x1265   : > { %s1440_s9 = scalar_lea.hbm %s1439_s30, 64  ;;  %p1445_p11 = scmp.lt.s32.totalorder %s1439_s30, %s1839_s4 }
0x1266   : > { %p1441_p8 = scmp.ne.s32.totalorder %s1439_s30, %s1440_s9  ;;  %p1446_p13 = scmp.lt.s32.totalorder %s1444_s18, %s1440_s9 }
0x1268   : > { %p1442_p9 = pnand %p1441_p8, %p1665_p5  ;;  %p1447_p0 = por %p1446_p13, %p1445_p11 }
0x126a   : > { %p1443_p12 = pneg %p1442_p9 }
0x126c   : > { %p1448_p3 = pnand %p1447_p0, %p1443_p12 }
0x126e   : > { %1451 = shalt.err (!%p1448_p3)
}
0x126f   : > { %s1541_s17 = smov 128   ;;  %s1542_s14 = smov 8  }
0x1270   : > { %1128 = dma.vmem_to_hbm [thread:$0]  (%p1665_p5), %s905_s29, 1024, %s907_s27, %s892_s26, %s1541_s17, %s1541_s17, %s1542_s14  }
0x1271   : > { %s933_s11 = sshll.u32 %s1841_s6, 4  ;;  %s1543_s10 = smov [#allocation15]   ;;  %s934_s11 = int_to_ptr.hbm [resolvable:$true] %s933_s11 }
0x1272   : > { %s931_s19 = sshll.u32 %s1543_s10, 4  ;;  %p1855_p7 = pmov %p1854_p4  ;;  %s932_s19 = int_to_ptr.vmem [resolvable:$true] %s931_s19 }
0x1273   : > { %p1856_p10 = pmov %p1854_p4 }
0x1274   : > { %1132 = dma.vmem_to_hbm [thread:$0]  (%p1855_p7), %s932_s19, 128, %s934_s11, [#allocation14]  }
0x1275   : > { %1509 = dma.done.wait (%p1856_p10), [#allocation14], 256   ;;  %p1857_p2 = pmov %p1854_p4 }
0x1277   : > { %1511 = vsyncadd (%p1857_p2), [#allocation14], 4294967040 }
0x1278 PF: > { %s955_s13 = sand.u32 1, %s1518_s21   ;;  %p1858_p5 = scmp.ge.s32.totalorder %s1530_s24, 2 }
0x1279   : > { %s956_s29 = scalar_lea.sflag [#allocation6], %s955_s13 }
0x127a   : > { %p1153_p1 = pnand %p1858_p5, %p1614_p6 }
0x127c   : > { %p1154_p4 = pneg %p1153_p1 }
0x127e   : > { %1513 = dma.done.wait (%p1154_p4), %s956_s29, 1024  }
0x127f   : > { %1515 = vsyncadd (%p1154_p4), %s956_s29, 4294966272  ;;  %p23_p8 = scmp.ge.s32.totalorder %s1650_s7, 4   ;;  %s1859_s21 = smov %s1522_s22 }
0x1280   : > { %s1860_s22 = smov %s1526_s23  ;;  %s1861_s23 = smov %s1661_s12 }
0x1281   : > { %s1862_s24 = smov %s1650_s7  ;;  %25 = sbr.rel (!%p23_p8) target bundleno = 8 (0x8), region = 131 }
0x1286   :  { %962 = vsyncpa [#allocation5], 1 }
0x1287   :  { %964 = vsyncpa [#allocation5 + $0x1], 1 }
0x1288   :  { %965 = vsyncpa [#allocation8], 1 }
0x1289   :  { %966 = vsyncpa [#allocation11], 1 }
0x128a   :  { %967 = vsyncpa [#allocation6], 1 }
0x128b   :  { %969 = vsyncpa [#allocation6 + $0x1], 1 }
0x128c   :  { %970 = vsyncpa [#allocation14], 1 }

</bundles_post_ra>
